<compile_context>
chip_gen: v7x
topology: tpu7x:2x2x1
jax: 0.10.0
libtpu: 0.0.40
codegen_flags: <defaults>
</compile_context>

<pallas_src>
import functools
from typing import NamedTuple

import jax
import jax.numpy as jnp
from jax.experimental import pallas as pl
from jax.experimental.pallas import tpu as pltpu

LN_EPS = 1e-5  # torch.nn.LayerNorm default


class LayerCfg(NamedTuple):
    activation: str
    use_layernorm: bool
    skip_connection: bool
    d_out: int       # true output width (LayerNorm statistics use this)
    d_out_pad: int   # lane-padded output width (multiple of 128)


def _cdiv(a, b):
    return -(-a // b)


def _round_up(x, m):
    return _cdiv(x, m) * m


def _vmem_limit_bytes():
    try:
        cap = int(pltpu.get_tpu_info().vmem_capacity_bytes)
    except Exception:
        cap = 64 << 20                      # conservative: v7x physical VMEM
    # Leave headroom for compiler-internal scratch; ~48 MiB on v7x, ~100 MiB on
    # the 128 MiB v5e/v6e parts.
    return max(min(cap - (16 << 20), 100 << 20), 32 << 20)


def _apply_activation(h, activation):
    if activation == 'relu':
        return jnp.maximum(h, jnp.float32(0.0))
    if activation == 'leakyrelu':
        return jnp.where(h >= 0, h, jnp.float32(0.2) * h)
    if activation == 'sigmoid':
        return jax.nn.sigmoid(h)
    if activation == 'tanh':
        return jnp.tanh(h)
    raise ValueError(f'unsupported activation: {activation}')


# --------------------------------------------------------------------------
# Kernel: full (sub-)stack of SingleFeedForwardNN layers on a (tr, D) row tile.
# --------------------------------------------------------------------------
def _ffn_stack_kernel(x_ref, *refs, cfgs):
    o_ref = refs[-1]
    params = refs[:-1]
    carry_dtype = x_ref.dtype
    h = x_ref[...]                                   # (tr, DIN0), native dtype
    n_layers = len(cfgs)

    for li, cfg in enumerate(cfgs):
        w_ref, b_ref, g_ref, beta_ref = params[4 * li: 4 * li + 4]

        # MXU matmul in the operands' native dtype (bf16 x bf16 -> f32 acc).
        z = jnp.dot(h, w_ref[...], preferred_element_type=jnp.float32)
        z = z + b_ref[...].astype(jnp.float32)
        z = _apply_activation(z, cfg.activation)
        # (eval-mode dropout = identity; see TODO at top of file)

        if cfg.skip_connection:
            z = z + h.astype(jnp.float32)

        if cfg.use_layernorm:
            if cfg.d_out_pad != cfg.d_out:
                # Lane-padded width: mask padded lanes out of the statistics and
                # normalize by the TRUE width (matches nn.LayerNorm exactly).
                lane = jax.lax.broadcasted_iota(jnp.int32, z.shape, z.ndim - 1)
                mask = (lane < cfg.d_out).astype(jnp.float32)
                inv_n = jnp.float32(1.0 / cfg.d_out)
                mean = jnp.sum(z * mask, axis=-1, keepdims=True) * inv_n
                diff = (z - mean) * mask
                var = jnp.sum(diff * diff, axis=-1, keepdims=True) * inv_n
            else:
                mean = jnp.mean(z, axis=-1, keepdims=True)
                diff = z - mean
                var = jnp.mean(diff * diff, axis=-1, keepdims=True)   # biased
            inv = jax.lax.rsqrt(var + jnp.float32(LN_EPS))            # EUP
            z = (g_ref[...].astype(jnp.float32) * (diff * inv)
                 + beta_ref[...].astype(jnp.float32))

        if li + 1 < n_layers:
            h = z.astype(carry_dtype)
        else:
            o_ref[...] = z.astype(o_ref.dtype)


# --------------------------------------------------------------------------
# Row-tile sizing (VMEM-budget aware, v7x dual-TC aware, low padding waste).
# --------------------------------------------------------------------------
def _pick_tile_rows(n_rows, din_pad, dout_pad, max_width, in_isz, out_isz,
                    param_bytes, vmem_limit):
    # Grid-invariant params are DMA'd once (constant index_map) but the pipeline
    # still keeps a 2-deep revolving buffer for them -> count them twice.
    avail = vmem_limit - 2 * param_bytes - (4 << 20)
    # Per row: double-buffered input/output slabs + ~2 f32 temporaries at the
    # widest intermediate width (activation / skip / LayerNorm epilogue).
    per_row = 2 * (din_pad * in_isz + dout_pad * out_isz) + 8 * max_width
    tr = max(8, min(int(avail // max(per_row, 1)), 1024))
    tr -= tr % 8
    # v7x has two TensorCores: keep >= 2 grid steps so the "parallel" row axis
    # can actually be split across them.
    if n_rows >= 16:
        tr = min(tr, _round_up(_cdiv(n_rows, 2), 8))
    tr = max(tr, 8)
    # Keep row-padding waste under ~12.5% (dead rows pay full matmul/LN/DMA).
    while tr > 8 and (_cdiv(n_rows, tr) * tr - n_rows) * 8 > n_rows:
        tr -= 8
    return tr, _cdiv(n_rows, tr) * tr


def _pad_row(v, d_pad):
    d = v.shape[0]
    if d_pad != d:
        v = jnp.pad(v, (0, d_pad - d))
    return v.reshape(1, d_pad)


# --------------------------------------------------------------------------
# One fused pallas_call over a chunk of consecutive layers.
# --------------------------------------------------------------------------
def ffn_stack(x, chunk, *, vmem_limit=None):
    if vmem_limit is None:
        vmem_limit = _vmem_limit_bytes()

    orig_shape = x.shape
    din0 = orig_shape[-1]
    dout_last = chunk[-1]['w'].shape[1]

    x2 = x.reshape(-1, din0)
    n_rows = x2.shape[0]

    DIN0 = _round_up(din0, 128)
    if DIN0 != din0:
        x2 = jnp.pad(x2, ((0, 0), (0, DIN0 - din0)))

    cfgs, param_arrays, param_specs = [], [], []
    param_bytes = 0
    widths = [DIN0]
    prev = DIN0
    for p in chunk:
        din, dout = p['w'].shape
        DIN, DOUT = _round_up(din, 128), _round_up(dout, 128)
        assert DIN == prev, "chained layer dims must match"
        w = p['w']
        if (DIN, DOUT) != (din, dout):
            w = jnp.pad(w, ((0, DIN - din), (0, DOUT - dout)))
        b = _pad_row(p['b'], DOUT)
        g = _pad_row(p['gamma'], DOUT)
        bt = _pad_row(p['beta'], DOUT)
        param_arrays += [w, b, g, bt]
        # Grid-invariant (resident) operands: constant index_map -> fetched once.
        param_specs += [
            pl.BlockSpec((DIN, DOUT), lambda i: (0, 0)),
            pl.BlockSpec((1, DOUT), lambda i: (0, 0)),
            pl.BlockSpec((1, DOUT), lambda i: (0, 0)),
            pl.BlockSpec((1, DOUT), lambda i: (0, 0)),
        ]
        param_bytes += (w.size * w.dtype.itemsize
                        + (b.size + g.size + bt.size) * b.dtype.itemsize)
        cfgs.append(LayerCfg(p['activation'], bool(p['use_layernorm']),
                             bool(p['skip_connection']), dout, DOUT))
        widths.append(DOUT)
        prev = DOUT
    DOUT_LAST = prev

    in_isz = jnp.dtype(x.dtype).itemsize
    out_isz = in_isz
    tr, r_pad = _pick_tile_rows(n_rows, DIN0, DOUT_LAST, max(widths),
                                in_isz, out_isz, param_bytes, vmem_limit)
    if r_pad != n_rows:
        x2 = jnp.pad(x2, ((0, r_pad - n_rows), (0, 0)))

    flops = sum(2 * r_pad * _round_up(p['w'].shape[0], 128)
                * _round_up(p['w'].shape[1], 128) for p in chunk)
    transc = 0
    for cfg in cfgs:
        if cfg.activation in ('sigmoid', 'tanh'):
            transc += r_pad * cfg.d_out_pad
        if cfg.use_layernorm:
            transc += r_pad                      # one rsqrt per row
    bytes_accessed = (r_pad * DIN0 * in_isz + r_pad * DOUT_LAST * out_isz
                      + param_bytes)

    kernel = functools.partial(_ffn_stack_kernel, cfgs=tuple(cfgs))

    out = pl.pallas_call(
        kernel,
        out_shape=jax.ShapeDtypeStruct((r_pad, DOUT_LAST), x.dtype),
        grid_spec=pltpu.PrefetchScalarGridSpec(
            num_scalar_prefetch=0,
            grid=(r_pad // tr,),
            in_specs=[pl.BlockSpec((tr, DIN0), lambda i: (i, 0))] + param_specs,
            out_specs=pl.BlockSpec((tr, DOUT_LAST), lambda i: (i, 0)),
        ),
        compiler_params=pltpu.CompilerParams(
            dimension_semantics=("parallel",),     # rows split across v7x's 2 TCs
            vmem_limit_bytes=int(vmem_limit),
        ),
        cost_estimate=pl.CostEstimate(
            flops=int(flops),
            transcendentals=int(transc),
            bytes_accessed=int(bytes_accessed),
        ),
    )(x2, *param_arrays)

    out = out[:n_rows, :dout_last]
    return out.reshape(orig_shape[:-1] + (dout_last,))


# --------------------------------------------------------------------------
# MultiLayerFeedForwardNN: params + forward (kernel) + pure-JAX reference.
# --------------------------------------------------------------------------
def init_multilayer_ffn(key, input_dim, output_dim, num_hidden_layers=0,
                        hidden_dim=-1, activation='relu',
                        use_layernormalize=True, skip_connection=False,
                        dtype=jnp.float32):
    def make_layer(k, d_in, d_out, use_ln, skip):
        kw, kb = jax.random.split(k)
        limit = (6.0 / (d_in + d_out)) ** 0.5                   # xavier_uniform
        w = jax.random.uniform(kw, (d_in, d_out), jnp.float32, -limit, limit)
        bound = 1.0 / (d_in ** 0.5)                             # torch Linear bias
        b = jax.random.uniform(kb, (d_out,), jnp.float32, -bound, bound)
        return dict(w=w.astype(dtype), b=b.astype(dtype),
                    gamma=jnp.ones((d_out,), dtype),
                    beta=jnp.zeros((d_out,), dtype),
                    activation=activation,
                    use_layernorm=use_ln,
                    # module: skip only when the layer's input_dim == output_dim
                    skip_connection=bool(skip and (d_in == d_out)))

    layers = []
    if num_hidden_layers <= 0:
        key, sub = jax.random.split(key)
        layers.append(make_layer(sub, input_dim, output_dim, False, False))
    else:
        key, sub = jax.random.split(key)
        layers.append(make_layer(sub, input_dim, hidden_dim,
                                 use_layernormalize, skip_connection))
        for _ in range(num_hidden_layers - 1):
            key, sub = jax.random.split(key)
            layers.append(make_layer(sub, hidden_dim, hidden_dim,
                                     use_layernormalize, skip_connection))
        key, sub = jax.random.split(key)
        layers.append(make_layer(sub, hidden_dim, output_dim, False, False))
    return layers


def multilayer_ffn_forward(x, layers):
    """Fuses as many consecutive layers per pallas_call as fit the VMEM budget."""
    vmem_limit = _vmem_limit_bytes()
    budget = vmem_limit // 2          # other half goes to row slabs / temporaries
    chunks, cur, cur_bytes = [], [], 0
    for p in layers:
        din, dout = p['w'].shape
        DIN, DOUT = _round_up(din, 128), _round_up(dout, 128)
        pb = 2 * (DIN * DOUT * p['w'].dtype.itemsize
                  + 3 * DOUT * p['b'].dtype.itemsize)
        if cur and cur_bytes + pb > budget:
            chunks.append(cur)
            cur, cur_bytes = [], 0
        cur.append(p)
        cur_bytes += pb
    if cur:
        chunks.append(cur)

    out = x
    for c in chunks:
        out = ffn_stack(out, c, vmem_limit=vmem_limit)
    return out


def multilayer_ffn_ref(x, layers):
    """Pure-JAX reference matching the PyTorch module (eval mode: dropout off)."""
    out = x.astype(jnp.float32)
    for p in layers:
        inp = out
        h = jnp.dot(inp, p['w'].astype(jnp.float32)) + p['b'].astype(jnp.float32)
        h = _apply_activation(h, p['activation'])
        if p['skip_connection']:
            h = h + inp
        if p['use_layernorm']:
            mean = jnp.mean(h, axis=-1, keepdims=True)
            var = jnp.mean((h - mean) ** 2, axis=-1, keepdims=True)  # biased
            h = (p['gamma'].astype(jnp.float32) * (h - mean)
                 * jax.lax.rsqrt(var + LN_EPS) + p['beta'].astype(jnp.float32))
        out = h
    return out.astype(x.dtype)


if __name__ == "__main__":
    key = jax.random.PRNGKey(0)
    kx, kp1, kp2 = jax.random.split(key, 3)

    batch, seq = 2, 8
    input_dim, hidden_dim, output_dim = 32, 128, 32
    num_hidden_layers = 2

    # --- f32 (PyTorch default dtype): relu + LayerNorm + skip --------------
    x = jax.random.normal(kx, (batch, seq, input_dim), dtype=jnp.float32)
    layers = init_multilayer_ffn(
        kp1, input_dim, output_dim, num_hidden_layers=num_hidden_layers,
        hidden_dim=hidden_dim, activation='relu',
        use_layernormalize=True, skip_connection=True, dtype=jnp.float32)

    out = jax.block_until_ready(multilayer_ffn_forward(x, layers))
    ref = multilayer_ffn_ref(x, layers)
    assert out.shape == (batch, seq, output_dim) and out.dtype == x.dtype
    assert jnp.allclose(out, ref, atol=1e-3, rtol=1e-3), "f32 mismatch vs reference"

    # --- bf16 end-to-end (native MXU bf16 path), tanh + masked LN (hidden=96)
    layers_bf16 = init_multilayer_ffn(
        kp2, input_dim, output_dim, num_hidden_layers=num_hidden_layers,
        hidden_dim=96, activation='tanh',
        use_layernormalize=True, skip_connection=True, dtype=jnp.bfloat16)
    x16 = x.astype(jnp.bfloat16)

    out16 = jax.block_until_ready(multilayer_ffn_forward(x16, layers_bf16))
    ref16 = multilayer_ffn_ref(x16, layers_bf16)
    assert out16.shape == (batch, seq, output_dim) and out16.dtype == jnp.bfloat16
    assert jnp.allclose(out16.astype(jnp.float32), ref16.astype(jnp.float32),
                        atol=1e-1, rtol=1e-1), "bf16 mismatch vs reference"

    print("KERNEL_OK")
</pallas_src>

<mosaic_0001>
module attributes {stable_mosaic.version = 11 : i64} {
  func.func @_ffn_stack_kernel(%arg0: i32, %arg1: memref<8x128xf32, #tpu.memory_space<vmem>>, %arg2: memref<128x128xf32, #tpu.memory_space<vmem>>, %arg3: memref<1x128xf32, #tpu.memory_space<vmem>>, %arg4: memref<1x128xf32, #tpu.memory_space<vmem>>, %arg5: memref<1x128xf32, #tpu.memory_space<vmem>>, %arg6: memref<128x128xf32, #tpu.memory_space<vmem>>, %arg7: memref<1x128xf32, #tpu.memory_space<vmem>>, %arg8: memref<1x128xf32, #tpu.memory_space<vmem>>, %arg9: memref<1x128xf32, #tpu.memory_space<vmem>>, %arg10: memref<128x128xf32, #tpu.memory_space<vmem>>, %arg11: memref<1x128xf32, #tpu.memory_space<vmem>>, %arg12: memref<1x128xf32, #tpu.memory_space<vmem>>, %arg13: memref<1x128xf32, #tpu.memory_space<vmem>>, %arg14: memref<8x128xf32, #tpu.memory_space<vmem>>) attributes {dimension_semantics = [#tpu.dimension_semantics<parallel>], iteration_bounds = array<i64: 2>, scalar_prefetch = 0 : i64, scratch_operands = 0 : i64, tpu.core_type = #tpu.core_type<tc>, window_params = [{transform_indices = @transform_0, window_bounds = array<i64: 8, 128>}, {pipeline_mode = #tpu.pipeline_mode<synchronous>, transform_indices = @transform_1, window_bounds = array<i64: 128, 128>}, {pipeline_mode = #tpu.pipeline_mode<synchronous>, transform_indices = @transform_2, window_bounds = array<i64: 1, 128>}, {pipeline_mode = #tpu.pipeline_mode<synchronous>, transform_indices = @transform_3, window_bounds = array<i64: 1, 128>}, {pipeline_mode = #tpu.pipeline_mode<synchronous>, transform_indices = @transform_4, window_bounds = array<i64: 1, 128>}, {pipeline_mode = #tpu.pipeline_mode<synchronous>, transform_indices = @transform_5, window_bounds = array<i64: 128, 128>}, {pipeline_mode = #tpu.pipeline_mode<synchronous>, transform_indices = @transform_6, window_bounds = array<i64: 1, 128>}, {pipeline_mode = #tpu.pipeline_mode<synchronous>, transform_indices = @transform_7, window_bounds = array<i64: 1, 128>}, {pipeline_mode = #tpu.pipeline_mode<synchronous>, transform_indices = @transform_8, window_bounds = array<i64: 1, 128>}, {pipeline_mode = #tpu.pipeline_mode<synchronous>, transform_indices = @transform_9, window_bounds = array<i64: 128, 128>}, {pipeline_mode = #tpu.pipeline_mode<synchronous>, transform_indices = @transform_10, window_bounds = array<i64: 1, 128>}, {pipeline_mode = #tpu.pipeline_mode<synchronous>, transform_indices = @transform_11, window_bounds = array<i64: 1, 128>}, {pipeline_mode = #tpu.pipeline_mode<synchronous>, transform_indices = @transform_12, window_bounds = array<i64: 1, 128>}, {transform_indices = @transform_13, window_bounds = array<i64: 8, 128>}]} {
    %c0 = arith.constant 0 : index
    %c0_0 = arith.constant 0 : index
    %0 = vector.load %arg1[%c0, %c0_0] : memref<8x128xf32, #tpu.memory_space<vmem>>, vector<8x128xf32>
    %c0_1 = arith.constant 0 : index
    %c0_2 = arith.constant 0 : index
    %1 = vector.load %arg2[%c0_1, %c0_2] : memref<128x128xf32, #tpu.memory_space<vmem>>, vector<128x128xf32>
    %cst = arith.constant dense<0.000000e+00> : vector<8x128xf32>
    %2 = tpu.matmul %0, %1, %cst {dimension_numbers = #tpu.dot_dimension_numbers<[1], [0], [0], [1], [0, 0, 1, 1], [], []>} : vector<8x128xf32>, vector<128x128xf32>, vector<8x128xf32> -> vector<8x128xf32>
    %c0_3 = arith.constant 0 : index
    %c0_4 = arith.constant 0 : index
    %3 = vector.load %arg3[%c0_3, %c0_4] : memref<1x128xf32, #tpu.memory_space<vmem>>, vector<1x128xf32>
    %4 = vector.broadcast %3 : vector<1x128xf32> to vector<8x128xf32>
    %5 = arith.addf %2, %4 : vector<8x128xf32>
    %cst_5 = arith.constant 0.000000e+00 : f32
    %6 = vector.broadcast %cst_5 : f32 to vector<8x128xf32>
    %7 = arith.maximumf %5, %6 : vector<8x128xf32>
    %cst_6 = arith.constant dense<0.000000e+00> : vector<8xf32>
    %8 = vector.multi_reduction <add>, %7, %cst_6 [1] : vector<8x128xf32> to vector<8xf32>
    %9 = vector.shape_cast %8 : vector<8xf32> to vector<8x1xf32>
    %cst_7 = arith.constant 1.280000e+02 : f32
    %10 = vector.broadcast %cst_7 : f32 to vector<8x1xf32>
    %11 = arith.divf %9, %10 : vector<8x1xf32>
    %12 = vector.broadcast %11 : vector<8x1xf32> to vector<8x128xf32>
    %13 = arith.subf %7, %12 : vector<8x128xf32>
    %14 = arith.mulf %13, %13 : vector<8x128xf32>
    %cst_8 = arith.constant dense<0.000000e+00> : vector<8xf32>
    %15 = vector.multi_reduction <add>, %14, %cst_8 [1] : vector<8x128xf32> to vector<8xf32>
    %16 = vector.shape_cast %15 : vector<8xf32> to vector<8x1xf32>
    %cst_9 = arith.constant 1.280000e+02 : f32
    %17 = vector.broadcast %cst_9 : f32 to vector<8x1xf32>
    %18 = arith.divf %16, %17 : vector<8x1xf32>
    %cst_10 = arith.constant 9.99999974E-6 : f32
    %19 = vector.broadcast %cst_10 : f32 to vector<8x1xf32>
    %20 = arith.addf %18, %19 : vector<8x1xf32>
    %21 = math.rsqrt %20 : vector<8x1xf32>
    %c0_11 = arith.constant 0 : index
    %c0_12 = arith.constant 0 : index
    %22 = vector.load %arg4[%c0_11, %c0_12] : memref<1x128xf32, #tpu.memory_space<vmem>>, vector<1x128xf32>
    %23 = vector.broadcast %21 : vector<8x1xf32> to vector<8x128xf32>
    %24 = arith.mulf %13, %23 : vector<8x128xf32>
    %25 = vector.broadcast %22 : vector<1x128xf32> to vector<8x128xf32>
    %26 = arith.mulf %25, %24 : vector<8x128xf32>
    %c0_13 = arith.constant 0 : index
    %c0_14 = arith.constant 0 : index
    %27 = vector.load %arg5[%c0_13, %c0_14] : memref<1x128xf32, #tpu.memory_space<vmem>>, vector<1x128xf32>
    %28 = vector.broadcast %27 : vector<1x128xf32> to vector<8x128xf32>
    %29 = arith.addf %26, %28 : vector<8x128xf32>
    %c0_15 = arith.constant 0 : index
    %c0_16 = arith.constant 0 : index
    %30 = vector.load %arg6[%c0_15, %c0_16] : memref<128x128xf32, #tpu.memory_space<vmem>>, vector<128x128xf32>
    %cst_17 = arith.constant dense<0.000000e+00> : vector<8x128xf32>
    %31 = tpu.matmul %29, %30, %cst_17 {dimension_numbers = #tpu.dot_dimension_numbers<[1], [0], [0], [1], [0, 0, 1, 1], [], []>} : vector<8x128xf32>, vector<128x128xf32>, vector<8x128xf32> -> vector<8x128xf32>
    %c0_18 = arith.constant 0 : index
    %c0_19 = arith.constant 0 : index
    %32 = vector.load %arg7[%c0_18, %c0_19] : memref<1x128xf32, #tpu.memory_space<vmem>>, vector<1x128xf32>
    %33 = vector.broadcast %32 : vector<1x128xf32> to vector<8x128xf32>
    %34 = arith.addf %31, %33 : vector<8x128xf32>
    %cst_20 = arith.constant 0.000000e+00 : f32
    %35 = vector.broadcast %cst_20 : f32 to vector<8x128xf32>
    %36 = arith.maximumf %34, %35 : vector<8x128xf32>
    %37 = arith.addf %36, %29 : vector<8x128xf32>
    %cst_21 = arith.constant dense<0.000000e+00> : vector<8xf32>
    %38 = vector.multi_reduction <add>, %37, %cst_21 [1] : vector<8x128xf32> to vector<8xf32>
    %39 = vector.shape_cast %38 : vector<8xf32> to vector<8x1xf32>
    %cst_22 = arith.constant 1.280000e+02 : f32
    %40 = vector.broadcast %cst_22 : f32 to vector<8x1xf32>
    %41 = arith.divf %39, %40 : vector<8x1xf32>
    %42 = vector.broadcast %41 : vector<8x1xf32> to vector<8x128xf32>
    %43 = arith.subf %37, %42 : vector<8x128xf32>
    %44 = arith.mulf %43, %43 : vector<8x128xf32>
    %cst_23 = arith.constant dense<0.000000e+00> : vector<8xf32>
    %45 = vector.multi_reduction <add>, %44, %cst_23 [1] : vector<8x128xf32> to vector<8xf32>
    %46 = vector.shape_cast %45 : vector<8xf32> to vector<8x1xf32>
    %cst_24 = arith.constant 1.280000e+02 : f32
    %47 = vector.broadcast %cst_24 : f32 to vector<8x1xf32>
    %48 = arith.divf %46, %47 : vector<8x1xf32>
    %cst_25 = arith.constant 9.99999974E-6 : f32
    %49 = vector.broadcast %cst_25 : f32 to vector<8x1xf32>
    %50 = arith.addf %48, %49 : vector<8x1xf32>
    %51 = math.rsqrt %50 : vector<8x1xf32>
    %c0_26 = arith.constant 0 : index
    %c0_27 = arith.constant 0 : index
    %52 = vector.load %arg8[%c0_26, %c0_27] : memref<1x128xf32, #tpu.memory_space<vmem>>, vector<1x128xf32>
    %53 = vector.broadcast %51 : vector<8x1xf32> to vector<8x128xf32>
    %54 = arith.mulf %43, %53 : vector<8x128xf32>
    %55 = vector.broadcast %52 : vector<1x128xf32> to vector<8x128xf32>
    %56 = arith.mulf %55, %54 : vector<8x128xf32>
    %c0_28 = arith.constant 0 : index
    %c0_29 = arith.constant 0 : index
    %57 = vector.load %arg9[%c0_28, %c0_29] : memref<1x128xf32, #tpu.memory_space<vmem>>, vector<1x128xf32>
    %58 = vector.broadcast %57 : vector<1x128xf32> to vector<8x128xf32>
    %59 = arith.addf %56, %58 : vector<8x128xf32>
    %c0_30 = arith.constant 0 : index
    %c0_31 = arith.constant 0 : index
    %60 = vector.load %arg10[%c0_30, %c0_31] : memref<128x128xf32, #tpu.memory_space<vmem>>, vector<128x128xf32>
    %cst_32 = arith.constant dense<0.000000e+00> : vector<8x128xf32>
    %61 = tpu.matmul %59, %60, %cst_32 {dimension_numbers = #tpu.dot_dimension_numbers<[1], [0], [0], [1], [0, 0, 1, 1], [], []>} : vector<8x128xf32>, vector<128x128xf32>, vector<8x128xf32> -> vector<8x128xf32>
    %c0_33 = arith.constant 0 : index
    %c0_34 = arith.constant 0 : index
    %62 = vector.load %arg11[%c0_33, %c0_34] : memref<1x128xf32, #tpu.memory_space<vmem>>, vector<1x128xf32>
    %63 = vector.broadcast %62 : vector<1x128xf32> to vector<8x128xf32>
    %64 = arith.addf %61, %63 : vector<8x128xf32>
    %cst_35 = arith.constant 0.000000e+00 : f32
    %65 = vector.broadcast %cst_35 : f32 to vector<8x128xf32>
    %66 = arith.maximumf %64, %65 : vector<8x128xf32>
    %c0_36 = arith.constant 0 : index
    %c0_37 = arith.constant 0 : index
    %67 = vector.load %arg14[%c0_36, %c0_37] : memref<8x128xf32, #tpu.memory_space<vmem>>, vector<8x128xf32>
    tpu.vector_store %arg14[%c0_36, %c0_37], %66 {strides = array<i32>} : memref<8x128xf32, #tpu.memory_space<vmem>>, vector<8x128xf32>,
    return
  }
  func.func @transform_0(%arg0: i32) -> (i32, i32) {
    %c0_i32 = arith.constant 0 : i32
    %c0_i32_0 = arith.constant 0 : i32
    return %arg0, %c0_i32 : i32, i32
  }
  func.func @transform_1(%arg0: i32) -> (i32, i32) {
    %c0_i32 = arith.constant 0 : i32
    %c0_i32_0 = arith.constant 0 : i32
    %c0_i32_1 = arith.constant 0 : i32
    return %c0_i32, %c0_i32_0 : i32, i32
  }
  func.func @transform_2(%arg0: i32) -> (i32, i32) {
    %c0_i32 = arith.constant 0 : i32
    %c0_i32_0 = arith.constant 0 : i32
    %c0_i32_1 = arith.constant 0 : i32
    return %c0_i32, %c0_i32_0 : i32, i32
  }
  func.func @transform_3(%arg0: i32) -> (i32, i32) {
    %c0_i32 = arith.constant 0 : i32
    %c0_i32_0 = arith.constant 0 : i32
    %c0_i32_1 = arith.constant 0 : i32
    return %c0_i32, %c0_i32_0 : i32, i32
  }
  func.func @transform_4(%arg0: i32) -> (i32, i32) {
    %c0_i32 = arith.constant 0 : i32
    %c0_i32_0 = arith.constant 0 : i32
    %c0_i32_1 = arith.constant 0 : i32
    return %c0_i32, %c0_i32_0 : i32, i32
  }
  func.func @transform_5(%arg0: i32) -> (i32, i32) {
    %c0_i32 = arith.constant 0 : i32
    %c0_i32_0 = arith.constant 0 : i32
    %c0_i32_1 = arith.constant 0 : i32
    return %c0_i32, %c0_i32_0 : i32, i32
  }
  func.func @transform_6(%arg0: i32) -> (i32, i32) {
    %c0_i32 = arith.constant 0 : i32
    %c0_i32_0 = arith.constant 0 : i32
    %c0_i32_1 = arith.constant 0 : i32
    return %c0_i32, %c0_i32_0 : i32, i32
  }
  func.func @transform_7(%arg0: i32) -> (i32, i32) {
    %c0_i32 = arith.constant 0 : i32
    %c0_i32_0 = arith.constant 0 : i32
    %c0_i32_1 = arith.constant 0 : i32
    return %c0_i32, %c0_i32_0 : i32, i32
  }
  func.func @transform_8(%arg0: i32) -> (i32, i32) {
    %c0_i32 = arith.constant 0 : i32
    %c0_i32_0 = arith.constant 0 : i32
    %c0_i32_1 = arith.constant 0 : i32
    return %c0_i32, %c0_i32_0 : i32, i32
  }
  func.func @transform_9(%arg0: i32) -> (i32, i32) {
    %c0_i32 = arith.constant 0 : i32
    %c0_i32_0 = arith.constant 0 : i32
    %c0_i32_1 = arith.constant 0 : i32
    return %c0_i32, %c0_i32_0 : i32, i32
  }
  func.func @transform_10(%arg0: i32) -> (i32, i32) {
    %c0_i32 = arith.constant 0 : i32
    %c0_i32_0 = arith.constant 0 : i32
    %c0_i32_1 = arith.constant 0 : i32
    return %c0_i32, %c0_i32_0 : i32, i32
  }
  func.func @transform_11(%arg0: i32) -> (i32, i32) {
    %c0_i32 = arith.constant 0 : i32
    %c0_i32_0 = arith.constant 0 : i32
    %c0_i32_1 = arith.constant 0 : i32
    return %c0_i32, %c0_i32_0 : i32, i32
  }
  func.func @transform_12(%arg0: i32) -> (i32, i32) {
    %c0_i32 = arith.constant 0 : i32
    %c0_i32_0 = arith.constant 0 : i32
    %c0_i32_1 = arith.constant 0 : i32
    return %c0_i32, %c0_i32_0 : i32, i32
  }
  func.func @transform_13(%arg0: i32) -> (i32, i32) {
    %c0_i32 = arith.constant 0 : i32
    %c0_i32_0 = arith.constant 0 : i32
    return %arg0, %c0_i32 : i32, i32
  }
}

</mosaic_0001>

<bundles_post_ra>
// kernel: tpu_custom_call.1
= control target key start
LH: loop header
LB: loop body
LE: loop exit
PB: predicated region body
PF: predicated region fallthrough
CT: control target
= control target key end

     0   :  { %s1880_s0 = inlined_call_operand.hbm [shape: f32[16,128], index: 0, kind: input, shape index: {}]   ;;  %s1881_s1 = inlined_call_operand.hbm [shape: f32[128,128], index: 1, kind: input, shape index: {}]   ;;  %s1882_s2 = inlined_call_operand.vmem [shape: f32[1,128], index: 2, kind: input, shape index: {}]   ;;  %s1883_s3 = inlined_call_operand.vmem [shape: f32[1,128], index: 3, kind: input, shape index: {}]   ;;  %s1884_s4 = inlined_call_operand.vmem [shape: f32[1,128], index: 4, kind: input, shape index: {}]   ;;  %s1885_s5 = inlined_call_operand.hbm [shape: f32[128,128], index: 5, kind: input, shape index: {}]   ;;  %s1886_s6 = inlined_call_operand.vmem [shape: f32[1,128], index: 6, kind: input, shape index: {}]   ;;  %s1887_s7 = inlined_call_operand.vmem [shape: f32[1,128], index: 7, kind: input, shape index: {}]   ;;  %s1888_s8 = inlined_call_operand.vmem [shape: f32[1,128], index: 8, kind: input, shape index: {}]   ;;  %s1889_s9 = inlined_call_operand.hbm [shape: f32[128,128], index: 9, kind: input, shape index: {}]   ;;  %s1890_s10 = inlined_call_operand.vmem [shape: f32[1,128], index: 10, kind: input, shape index: {}]   ;;  %s1891_s11 = inlined_call_operand.vmem [shape: f32[1,128], index: 11, kind: input, shape index: {}]   ;;  %s1892_s12 = inlined_call_operand.vmem [shape: f32[1,128], index: 12, kind: input, shape index: {}]   ;;  %s1893_s13 = inlined_call_operand.hbm [shape: f32[16,128], index: 13, kind: output, shape index: {}]  }
   0x1   :  { %1900 = sst [smem:[#allocation17_spill]] %s1888_s8 }
   0x2   :  { %1901 = sst [smem:[#allocation18_spill]] %s1890_s10 }
   0x3   :  { %1902 = sst [smem:[#allocation19_spill]] %s1893_s13 }
   0x4   :  { %18 = vsyncpa [#allocation3], 0 }
   0x5   :  { %20 = vsyncpa [#allocation3 + $0x1], 0 }
   0x6   :  { %21 = vsyncpa [#allocation6], 0 }
   0x7   :  { %22 = vsyncpa [#allocation9], 0 }
   0x8   :  { %23 = vsyncpa [#allocation4], 0 }
   0x9   :  { %25 = vsyncpa [#allocation4 + $0x1], 0  ;;  %s1562_s25 = smov 0   ;;  %s1564_s26 = smov 0  }
   0xa   :  { %s1566_s27 = smov 0   ;;  %s1568_s28 = smov 0  }
   0xb LB: > { %1903 = sst [smem:[#allocation15_spill]] %s1468_s25  ;;  %s1583_s11 = sadd.s32 4294967295, %s1480_s28   ;;  %s1480_s28 = sphi %s1568_s28, %s1929_s28   ;;  %s1476_s27 = sphi %s1566_s27, %s1928_s27   ;;  %s1472_s26 = sphi %s1564_s26, %s1927_s26   ;;  %s1468_s25 = sphi %s1562_s25, %s1926_s25  }
   0xc   : > { %s953_s12 = sadd.s32 4294967294, %s1480_s28   ;;  %p51_p0 = scmp.ne.s32.totalorder %s1472_s26, %s1468_s25 }
   0xd   : > { %p1895_p1 = scmp.eq.s32.totalorder %s1583_s11, 0  ;;  %p333_p3 = scmp.eq.s32.totalorder %s953_s12, 1 }
   0xe   : > { %p954_p5 = scmp.ge.s32.totalorder %s1480_s28, 1  ;;  %p340_p7 = scmp.lt.s32.totalorder %s1480_s28, 3 }
   0xf   : > { %p1592_p4 = por %p1895_p1, %p51_p0  ;;  %p1597_p6 = por %p333_p3, %p51_p0 }
  0x10   : > { %p1602_p8 = pnand %p954_p5, %p340_p7  ;;  %s1482_s15 = smov [#allocation5]  }
  0x11   : > { %s1904_s29 = scalar_select %p1592_p4, 1, 0 }
  0x12   : > { %s1905_s30 = scalar_select %p1597_p6, 1, 0 }
  0x13   : > { %s1907_s14 = scalar_select %p1602_p8, 1, 0 }
  0x14   : > { %1906 = sst [smem:[#allocation16_spill]] %s1905_s30  ;;  %s352_s16 = sshll.u32 %s1482_s15, 4  ;;  %s1606_s16 = int_to_ptr.vmem [resolvable:$true] %s352_s16 }
  0x15   : > { %p1222_p9 = pneg %p1602_p8  ;;  %s1483_s18 = smov [#allocation7]  }
  0x16   : > { %s374_s19 = sshll.u32 %s1483_s18, 4  ;;  %s1484_s20 = smov [#allocation8]   ;;  %s1617_s19 = int_to_ptr.vmem [resolvable:$true] %s374_s19 }
  0x17   : > { %p1613_p11 = pnand %p1222_p9, %p1895_p1  ;;  %s1619_s21 = sshll.u32 %s1484_s20, 4  ;;  %s397_s21 = int_to_ptr.vmem [resolvable:$true] %s1619_s21 }
  0x18   : > { %s1292_s24 = scalar_lea.hbm %s1881_s1, 2048 }
  0x19   : > { %p1293_p12 = scmp.ne.s32.totalorder %s1881_s1, %s1292_s24  ;;  %p1629_p13 = pneg %p1613_p11 }
  0x1a   : > { %p1299_p5 = scmp.lt.u32.totalorder %s1292_s24, %s1881_s1 }
  0x1b   : > { %p1295_p0 = pnand %p1629_p13, %p1293_p12 }
  0x1d   : > { %p1296_p3 = pneg %p1295_p0 }
  0x1f   : > { %p1301_p7 = pnand %p1299_p5, %p1296_p3 }
  0x21   : > { %1304 = shalt.err (!%p1301_p7)
}
  0x22   : > { %s1305_s22 = scalar_lea.vmem %s1606_s16, 2048  ;;  %p1313_p2 = scmp.lt.s32.totalorder %s1606_s16, %s1606_s16 }
  0x23   : > { %p1306_p9 = scmp.ne.s32.totalorder %s1606_s16, %s1305_s22  ;;  %p1314_p6 = scmp.lt.s32.totalorder %s1305_s22, %s1305_s22 }
  0x25   : > { %p1308_p10 = pnand %p1306_p9, %p1629_p13  ;;  %p1315_p12 = por %p1314_p6, %p1313_p2 }
  0x27   : > { %p1309_p1 = pneg %p1308_p10 }
  0x29   : > { %p1316_p0 = pnand %p1315_p12, %p1309_p1 }
  0x2b   : > { %1319 = shalt.err (!%p1316_p0)
}
  0x2c   : > { %s1485_s23 = smov 128   ;;  %s1486_s24 = smov 8  }
  0x2d   : > { %1225 = dma.hbm_to_vmem [thread:$0]  (!%p1613_p11), %s1881_s1, 2048, %s1606_s16, [#allocation6], %s1485_s23, %s1485_s23, %s1486_s24  }
  0x2e   : > { %s1320_s22 = scalar_lea.hbm %s1885_s5, 2048 }
  0x2f   : > { %p1321_p1 = scmp.ne.s32.totalorder %s1885_s5, %s1320_s22  ;;  %p1327_p10 = scmp.lt.u32.totalorder %s1320_s22, %s1885_s5 }
  0x31   : > { %p1323_p2 = pnand %p1321_p1, %p1629_p13 }
  0x33   : > { %p1324_p6 = pneg %p1323_p2 }
  0x35   : > { %p1329_p3 = pnand %p1327_p10, %p1324_p6 }
  0x37   : > { %1332 = shalt.err (!%p1329_p3)
}
  0x38   : > { %s1333_s16 = scalar_lea.vmem %s1617_s19, 2048  ;;  %p1341_p12 = scmp.lt.s32.totalorder %s1617_s19, %s1617_s19 }
  0x39   : > { %p1334_p5 = scmp.ne.s32.totalorder %s1617_s19, %s1333_s16  ;;  %p1342_p0 = scmp.lt.s32.totalorder %s1333_s16, %s1333_s16 }
  0x3b   : > { %p1336_p7 = pnand %p1334_p5, %p1629_p13  ;;  %p1343_p1 = por %p1342_p0, %p1341_p12 }
  0x3d   : > { %p1337_p9 = pneg %p1336_p7 }
  0x3f   : > { %p1344_p2 = pnand %p1343_p1, %p1337_p9 }
  0x41   : > { %1347 = shalt.err (!%p1344_p2)
}
  0x42   : > { %1228 = dma.hbm_to_vmem [thread:$0]  (!%p1613_p11), %s1885_s5, 2048, %s1617_s19, [#allocation6], %s1485_s23, %s1485_s23, %s1486_s24  }
  0x43   : > { %s1348_s12 = scalar_lea.hbm %s1889_s9, 2048 }
  0x44   : > { %p1349_p6 = scmp.ne.s32.totalorder %s1889_s9, %s1348_s12  ;;  %p1355_p5 = scmp.lt.u32.totalorder %s1348_s12, %s1889_s9 }
  0x46   : > { %p1351_p10 = pnand %p1349_p6, %p1629_p13 }
  0x48   : > { %p1352_p3 = pneg %p1351_p10 }
  0x4a   : > { %p1357_p7 = pnand %p1355_p5, %p1352_p3 }
  0x4c   : > { %1360 = shalt.err (!%p1357_p7)
}
  0x4d   : > { %s1361_s16 = scalar_lea.vmem %s397_s21, 2048  ;;  %p1369_p1 = scmp.lt.s32.totalorder %s397_s21, %s397_s21 }
  0x4e   : > { %p1362_p9 = scmp.ne.s32.totalorder %s397_s21, %s1361_s16  ;;  %p1370_p2 = scmp.lt.s32.totalorder %s1361_s16, %s1361_s16 }
  0x50   : > { %p1364_p12 = pnand %p1362_p9, %p1629_p13  ;;  %p1371_p4 = por %p1370_p2, %p1369_p1 }
  0x52   : > { %p1365_p0 = pneg %p1364_p12 }
  0x54   : > { %p1372_p8 = pnand %p1371_p4, %p1365_p0 }
  0x56   : > { %1375 = shalt.err (!%p1372_p8)
}
  0x57   : > { %1231 = dma.hbm_to_vmem [thread:$0]  (!%p1613_p11), %s1889_s9, 2048, %s397_s21, [#allocation9], %s1485_s23, %s1485_s23, %s1486_s24  }
  0x58   : > { %s1702_s30 = sadd.s32 1, %s1480_s28   ;;  %s38_s10 = sadd.s32 1, %s1476_s27 }
  0x59   : > { %s35_s17 = ssub.s32 %s1480_s28, %s1702_s30  ;;  %p45_p8 = scmp.ne.s32.totalorder %s1476_s27, %s1472_s26 }
  0x5a   : > { %p36_p4 = scmp.eq.s32.totalorder %s35_s17, 0  ;;  %p46_p13 = scmp.eq.s32.totalorder %s1480_s28, 0 }
  0x5b   : > { %p1243_p6 = scmp.lt.s32.totalorder %s1480_s28, 2  ;;  %p1910_p3 = scmp.eq.s32.totalorder %s1583_s11, 1 }
  0x5c   : > { %s1712_s13 = scalar_select %p36_p4, %s1476_s27, %s38_s10  }
  0x5d   : > { %p47_p10 = por %p46_p13, %p45_p8  ;;  %p1716_p5 = por %p1910_p3, %p45_p8 }
  0x5e   : > { %s419_s12 = sand.u32 1, %s1476_s27   ;;  %s960_s15 = sshll.u32 %s1480_s28, 7 }
  0x5f   : > { %s959_s21 = sshll.u32 %s419_s12, 3  ;;  %s1725_s18 = scalar_lea.hbm %s1880_s0, %s960_s15 }
  0x60   : > { %s423_s20 = scalar_lea.vmem [#allocation2], %s959_s21  ;;  %p1727_p11 = pnand %p1243_p6, %p47_p10 }
  0x61   : > { %s430_s22 = sshll.u32 %s423_s20, 4  ;;  %s420_s19 = scalar_lea.sflag [#allocation3], %s419_s12  ;;  %s1731_s22 = int_to_ptr.vmem [resolvable:$true] %s430_s22 }
  0x62   : > { %s1376_s8 = scalar_lea.hbm %s1725_s18, 128  ;;  %p1378_p9 = pneg %p1727_p11 }
  0x63   : > { %p1377_p7 = scmp.ne.s32.totalorder %s1725_s18, %s1376_s8  ;;  %s1381_s15 = scalar_lea.hbm %s1880_s0, 256 }
  0x64   : > { %p1382_p1 = scmp.lt.u32.totalorder %s1725_s18, %s1880_s0  ;;  %p1383_p2 = scmp.lt.u32.totalorder %s1381_s15, %s1376_s8 }
  0x65   : > { %p1379_p12 = pnand %p1378_p9, %p1377_p7  ;;  %p1385_p8 = scmp.lt.u32.totalorder %s1376_s8, %s1725_s18 }
  0x66   : > { %p1384_p4 = por %p1383_p2, %p1382_p1 }
  0x67   : > { %p1380_p0 = pneg %p1379_p12 }
  0x68   : > { %p1386_p13 = por %p1385_p8, %p1384_p4 }
  0x6a   : > { %p1387_p6 = pnand %p1386_p13, %p1380_p0 }
  0x6c   : > { %1390 = shalt.err (!%p1387_p6)
}
  0x6d   : > { %s1391_s12 = scalar_lea.vmem %s1731_s22, 128  ;;  %s1487_s24 = smov [#allocation2]  }
  0x6e   : > { %p1392_p10 = scmp.ne.s32.totalorder %s1731_s22, %s1391_s12  ;;  %s1396_s20 = sshll.u32 %s1487_s24, 4  ;;  %s1397_s20 = int_to_ptr.vmem [resolvable:$false] %s1396_s20 }
  0x6f   : > { %s1398_s17 = scalar_lea.vmem %s1397_s20, 256  ;;  %p1399_p12 = scmp.lt.s32.totalorder %s1731_s22, %s1397_s20 }
  0x70   : > { %p1394_p3 = pnand %p1392_p10, %p1378_p9  ;;  %p1400_p1 = scmp.lt.s32.totalorder %s1398_s17, %s1391_s12 }
  0x72   : > { %p1395_p7 = pneg %p1394_p3  ;;  %p1401_p2 = por %p1400_p1, %p1399_p12 }
  0x74   : > { %p1402_p4 = pnand %p1401_p2, %p1395_p7 }
  0x76   : > { %1405 = shalt.err (!%p1402_p4)
}
  0x77   : > { %1235 = dma.hbm_to_vmem [thread:$0]  (!%p1727_p11), %s1725_s18, 128, %s1731_s22, %s420_s19  }
  0x78   : > { %p1913_p0 = scmp.ne.s32.totalorder %s1907_s14, 0 }
  0x79   : > { %s1761_s8 = sand.u32 (!%p1913_p0), 1, %s1472_s26   ;;  %p1914_p9 = scmp.ne.s32.totalorder (!%p1913_p0), %s1904_s29, 0 }
  0x7a   : > { %439 = sbr.rel (%p1913_p0) target bundleno = 1458 (0x5b2), region = 72  ;;  %s962_s10 = sshll.u32 (!%p1913_p0), %s1761_s8, 3 }
  0x7b   : > { %s442_s15 = scalar_lea.sflag (!%p1913_p0), [#allocation3], %s1761_s8  ;;  %s1767_s21 = scalar_lea.vmem (!%p1913_p0), [#allocation2], %s962_s10 }
  0x81   : > { %1451 = dma.done.wait (%p1914_p9), %s442_s15, 128  }
  0x82   : > { %1453 = vsyncadd (%p1914_p9), %s442_s15, 4294967168  ;;  %p1915_p11 = scmp.eq.s32.totalorder %s1583_s11, 0 }
  0x84   : > { %1455 = dma.done.wait (%p1915_p11), [#allocation6], 4096   ;;  %p1916_p8 = pmov %p1915_p11 }
  0x86   : > { %1457 = vsyncadd (%p1916_p8), [#allocation6], 4294963200  ;;  %p1917_p13 = pmov %p1916_p8 }
  0x87   : > { %p1918_p6 = pmov %p1916_p8 }
  0x88   : > { %1459 = dma.done.wait (%p1917_p13), [#allocation9], 2048  }
  0x89   : > { %1461 = vsyncadd (%p1918_p6), [#allocation9], 4294965248  ;;  %v1488_v0 = vmov 0.0|0.0   ;;  %vm1489_vm0 = vmmov 0   ;;  %v1490_v1 = vmov 0.0   ;;  %v501_v2 = vld [vmem:[#allocation5] sm:$0xff] }
  0x8a   : > { %1134 = vmatprep.subr.bf16.mxu0 %v1488_v0  ;;  %1061 = vmatprep.mubr.msk.f32.mxu0 %vm1489_vm0, %v1490_v1  ;;  %v502_v3 = vld [vmem:[#allocation5 + $0x8] sm:$0xff]  ;;  %v503_v4 = vld [vmem:[#allocation5 + $0x10] sm:$0xff]  ;;  %v504_v6 = vld [vmem:[#allocation5 + $0x18] sm:$0xff]  ;;  %s1920_s18 = sld [smem:[#allocation18_spill]]  ;;  %s975_s22 = sshll.u32 %s1583_s11, 7 }
  0x8b   : > { %1158 = vmatprep.subr.bf16.mxu1 %v1488_v0  ;;  %1096 = vmatprep.mubr.msk.f32.mxu1 %vm1489_vm0, %v1490_v1  ;;  %v1135_v5 = vpack.c.bf16 %v502_v3, %v501_v2  ;;  %v1138_v7 = vpack.c.bf16 %v504_v6, %v503_v4  ;;  %v505_v8 = vld [vmem:[#allocation5 + $0x20] sm:$0xff]  ;;  %v506_v9 = vld [vmem:[#allocation5 + $0x28] sm:$0xff]  ;;  %v507_v11 = vld [vmem:[#allocation5 + $0x30] sm:$0xff]  ;;  %s499_s16 = scalar_lea.vmem [#allocation10], %s962_s10  ;;  %s1921_s24 = sld [smem:[#allocation19_spill]] }
  0x8c   : > { %v1141_v10 = vpack.c.bf16 %v506_v9, %v505_v8  ;;  %v508_v12 = vld [vmem:[#allocation5 + $0x38] sm:$0xff]  ;;  %v509_v14 = vld [vmem:[#allocation5 + $0x40] sm:$0xff]  ;;  %v510_v15 = vld [vmem:[#allocation5 + $0x48] sm:$0xff]  ;;  %s854_s19 = sshll.u32 %s499_s16, 4  ;;  %s841_s17 = scalar_lea.sflag [#allocation4], %s1761_s8  ;;  %s1838_s19 = int_to_ptr.vmem [resolvable:$true] %s854_s19 }
  0x8d   : > { %1136 = vmatpush3.bf16.msra.mxu0 %v1135_v5  ;;  %v1144_v13 = vpack.c.bf16 %v508_v12, %v507_v11  ;;  %v1147_v16 = vpack.c.bf16 %v510_v15, %v509_v14  ;;  %v511_v17 = vld [vmem:[#allocation5 + $0x50] sm:$0xff]  ;;  %v512_v18 = vld [vmem:[#allocation5 + $0x58] sm:$0xff]  ;;  %v513_v20 = vld [vmem:[#allocation5 + $0x60] sm:$0xff]  ;;  %s1406_s15 = scalar_lea.vmem %s1838_s19, 128  ;;  %s1491_s11 = smov [#allocation10]  }
  0x8e   : > { %1137 = vmatprep.subr.bf16.mxu0 %v1488_v0  ;;  %v1150_v19 = vpack.c.bf16 %v512_v18, %v511_v17  ;;  %v514_v21 = vld [vmem:[#allocation5 + $0x68] sm:$0xff]  ;;  %v515_v23 = vld [vmem:[#allocation5 + $0x70] sm:$0xff]  ;;  %v516_v24 = vld [vmem:[#allocation5 + $0x78] sm:$0xff]  ;;  %p1407_p10 = scmp.ne.s32.totalorder %s1838_s19, %s1406_s15  ;;  %s1410_s10 = sshll.u32 %s1491_s11, 4  ;;  %s1411_s10 = int_to_ptr.vmem [resolvable:$false] %s1410_s10 }
  0x8f   : > { %v1153_v22 = vpack.c.bf16 %v514_v21, %v513_v20  ;;  %v1156_v25 = vpack.c.bf16 %v516_v24, %v515_v23  ;;  %v500_v26 = vld [vmem:[%s1767_s21] sm:$0xff]  ;;  %v623_v32 = vld [vmem:[#allocation7] sm:$0xff]  ;;  %v624_v33 = vld [vmem:[#allocation7 + $0x8] sm:$0xff]  ;;  %s1919_s21 = sld [smem:[#allocation17_spill]]  ;;  %p1413_p12 = scmp.lt.s32.totalorder %s1838_s19, %s1411_s10 }
  0x90   : > { %v967_v27 = vld [vmem:[%s1882_s2] ss:$0 sm:$0xff]  ;;  %v1159_v35 = vpack.c.bf16 %v624_v33, %v623_v32  ;;  %v626_v36 = vld [vmem:[#allocation7 + $0x18] sm:$0xff]  ;;  %v627_v38 = vld [vmem:[#allocation7 + $0x20] sm:$0xff]  ;;  %p1408_p3 = pnand %p1407_p10, %p1716_p5 }
  0x91   : > { %1139 = vmatpush3.bf16.msra.mxu0 %v1138_v7  ;;  %v625_v34 = vld [vmem:[#allocation7 + $0x10] sm:$0xff]  ;;  %v628_v39 = vld [vmem:[#allocation7 + $0x28] sm:$0xff]  ;;  %v630_v46 = vld [vmem:[#allocation7 + $0x38] sm:$0xff]  ;;  %s1836_s20 = scalar_lea.hbm %s1921_s24, %s975_s22 }
  0x92   : > { %1140 = vmatprep.subr.bf16.mxu0 %v1488_v0  ;;  %1160 = vmatpush3.bf16.msra.mxu1 %v1159_v35  ;;  %v1162_v37 = vpack.c.bf16 %v626_v36, %v625_v34  ;;  %v1165_v40 = vpack.c.bf16 %v628_v39, %v627_v38  ;;  %v629_v45 = vld [vmem:[#allocation7 + $0x30] sm:$0xff]  ;;  %v631_v48 = vld [vmem:[#allocation7 + $0x40] sm:$0xff]  ;;  %v632_v49 = vld [vmem:[#allocation7 + $0x48] sm:$0xff]  ;;  %p1409_p7 = pneg %p1408_p3 }
  0x93   : > { %1161 = vmatprep.subr.bf16.mxu1 %v1488_v0  ;;  %v1168_v47 = vpack.c.bf16 %v630_v46, %v629_v45  ;;  %v1171_v50 = vpack.c.bf16 %v632_v49, %v631_v48  ;;  %v633_v51 = vld [vmem:[#allocation7 + $0x50] sm:$0xff]  ;;  %v634_v52 = vld [vmem:[#allocation7 + $0x58] sm:$0xff]  ;;  %v635_v54 = vld [vmem:[#allocation7 + $0x60] sm:$0xff] }
  0x94   : > { %v1174_v53 = vpack.c.bf16 %v634_v52, %v633_v51  ;;  %v636_v55 = vld [vmem:[#allocation7 + $0x68] sm:$0xff]  ;;  %v637_v57 = vld [vmem:[#allocation7 + $0x70] sm:$0xff]  ;;  %v638_v58 = vld [vmem:[#allocation7 + $0x78] sm:$0xff] }
  0x95   : > { %1142 = vmatpush3.bf16.msra.mxu0 %v1141_v10  ;;  %v1177_v56 = vpack.c.bf16 %v636_v55, %v635_v54  ;;  %v1180_v59 = vpack.c.bf16 %v638_v58, %v637_v57  ;;  %v969_v3 = vld [vmem:[%s1884_s4] ss:$0 sm:$0xff]  ;;  %v745_v12 = vld [vmem:[#allocation8] sm:$0xff]  ;;  %v756_v32 = vld [vmem:[#allocation8 + $0x58] sm:$0xff] }
  0x96   : > { %1143 = vmatprep.subr.bf16.mxu0 %v1488_v0  ;;  %1163 = vmatpush3.bf16.msra.mxu1 %v1162_v37  ;;  %v970_v6 = vld [vmem:[%s1886_s6] ss:$0 sm:$0xff]  ;;  %v749_v18 = vld [vmem:[#allocation8 + $0x20] sm:$0xff]  ;;  %v758_v35 = vld [vmem:[#allocation8 + $0x68] sm:$0xff] }
  0x97   : > { %1164 = vmatprep.subr.bf16.mxu1 %v1488_v0  ;;  %v747_v14 = vld [vmem:[#allocation8 + $0x10] sm:$0xff]  ;;  %v757_v34 = vld [vmem:[#allocation8 + $0x60] sm:$0xff]  ;;  %v760_v38 = vld [vmem:[#allocation8 + $0x78] sm:$0xff] }
  0x98   : > { %v1201_v36 = vpack.c.bf16 %v758_v35, %v757_v34  ;;  %v759_v37 = vld [vmem:[#allocation8 + $0x70] sm:$0xff] }
  0x99   : > { %1145 = vmatpush3.bf16.msra.mxu0 %v1144_v13  ;;  %v746_v13 = vld [vmem:[#allocation8 + $0x8] sm:$0xff]  ;;  %v1204_v39 = vpack.c.bf16 %v760_v38, %v759_v37  ;;  %v972_v46 = vld [vmem:[%s1919_s21] ss:$0 sm:$0xff]  ;;  %s1412_s21 = scalar_lea.vmem %s1411_s10, 256 }
  0x9a   : > { %1146 = vmatprep.subr.bf16.mxu0 %v1488_v0  ;;  %1166 = vmatpush3.bf16.msra.mxu1 %v1165_v40  ;;  %v1183_v15 = vpack.c.bf16 %v746_v13, %v745_v12  ;;  %p1414_p1 = scmp.lt.s32.totalorder %s1412_s21, %s1406_s15 }
  0x9b   : > { %1167 = vmatprep.subr.bf16.mxu1 %v1488_v0 }
  0x9c   : > { %p1415_p2 = por %p1414_p1, %p1413_p12 }
  0x9d   : > { %1148 = vmatpush3.bf16.msra.mxu0 %v1147_v16  ;;  %v748_v16 = vld [vmem:[#allocation8 + $0x18] sm:$0xff] }
  0x9e   : > { %1149 = vmatprep.subr.bf16.mxu0 %v1488_v0  ;;  %1169 = vmatpush3.bf16.msra.mxu1 %v1168_v47  ;;  %v1186_v17 = vpack.c.bf16 %v748_v16, %v747_v14  ;;  %p1416_p4 = pnand %p1415_p2, %p1409_p7 }
  0x9f   : > { %1170 = vmatprep.subr.bf16.mxu1 %v1488_v0 }
  0xa1   : > { %1151 = vmatpush3.bf16.msra.mxu0 %v1150_v19  ;;  %v750_v19 = vld [vmem:[#allocation8 + $0x28] sm:$0xff] }
  0xa2   : > { %1152 = vmatprep.subr.bf16.mxu0 %v1488_v0  ;;  %1172 = vmatpush3.bf16.msra.mxu1 %v1171_v50  ;;  %v1189_v20 = vpack.c.bf16 %v750_v19, %v749_v18 }
  0xa3   : > { %1173 = vmatprep.subr.bf16.mxu1 %v1488_v0 }
  0xa5   : > { %1154 = vmatpush3.bf16.msra.mxu0 %v1153_v22 }
  0xa6   : > { %1155 = vmatprep.subr.bf16.mxu0 %v1488_v0  ;;  %1175 = vmatpush3.bf16.msra.mxu1 %v1174_v53 }
  0xa7   : > { %1176 = vmatprep.subr.bf16.mxu1 %v1488_v0 }
  0xa9   : > { %1157 = vmatpush3.bf16.msra.mxu0 %v1156_v25  ;;  %v751_v25 = vld [vmem:[#allocation8 + $0x30] sm:$0xff] }
  0xaa   : > { %1182 = vmatprep.subr.bf16.mxu0 %v1488_v0  ;;  %1178 = vmatpush3.bf16.msra.mxu1 %v1177_v56 }
  0xab   : > { %1179 = vmatprep.subr.bf16.mxu1 %v1488_v0 }
  0xac   : > { %1062 = vmatmul.mubr.f32.vlgmr.msra.gmra.mrb[0].mxu0 %v500_v26  ;;  %v752_v26 = vld [vmem:[#allocation8 + $0x38] sm:$0xff] }
  0xad   : > { %1131 = vmatprep.mubr.msk.f32.mxu0 %vm1489_vm0, %v1490_v1  ;;  %v968_v1 = vld [vmem:[%s1883_s3] ss:$0 sm:$0xff]  ;;  %1184 = vmatpush3.bf16.msra.mxu0 %v1183_v15 }
  0xae   : > { %1181 = vmatpush3.bf16.msra.mxu1 %v1180_v59  ;;  %1185 = vmatprep.subr.bf16.mxu0 %v1488_v0 }
  0xb1   : > { %1187 = vmatpush3.bf16.msra.mxu0 %v1186_v17 }
  0xb2   : > { %1188 = vmatprep.subr.bf16.mxu0 %v1488_v0 }
  0xb5   : > { %1190 = vmatpush3.bf16.msra.mxu0 %v1189_v20 }
  0xb6   : > { %1191 = vmatprep.subr.bf16.mxu0 %v1488_v0 }
 0x17f   : > { %v590_v28 = vpop.f32.mrb[0].mxu0 }
 0x180   : > { %v591_v29 = vadd.f32 %v967_v27, %v590_v28  ;;  %v1063_v30 = vpop.f32.mrb[1].mxu0  ;;  %v1192_v27 = vpack.c.bf16 %v752_v26, %v751_v25  ;;  %v753_v28 = vld [vmem:[#allocation8 + $0x40] sm:$0xff] }
 0x182   : > { %v594_v31 = vmax.f32 %v591_v29, 0.0  ;;  %1193 = vmatpush3.bf16.msra.mxu0 %v1192_v27  ;;  %v754_v29 = vld [vmem:[#allocation8 + $0x48] sm:$0xff] }
 0x183   : > { %1194 = vmatprep.subr.bf16.mxu0 %v1488_v0  ;;  %v1195_v30 = vpack.c.bf16 %v754_v29, %v753_v28 }
 0x184   : > { %595 = vadd.xlane.f32.xlu0 %v594_v31 }
 0x186   : > { %1196 = vmatpush3.bf16.msra.mxu0 %v1195_v30 }
 0x187   : > { %1197 = vmatprep.subr.bf16.mxu0 %v1488_v0 }
 0x211   : > { %v596_v41 = vpop.xlane.xlu0 %595 }
 0x212   : > { %v598_v42 = vmul.f32 0.0078125, %v596_v41 }
 0x214   : > { %v599_v43 = vsub.f32 %v594_v31, %v598_v42  ;;  %v755_v31 = vld [vmem:[#allocation8 + $0x50] sm:$0xff] }
 0x215   : > { %v1198_v33 = vpack.c.bf16 %v756_v32, %v755_v31 }
 0x216   : > { %v600_v44 = vmul.f32 %v599_v43, %v599_v43 }
 0x217   : > { %1199 = vmatpush3.bf16.msra.mxu0 %v1198_v33 }
 0x218   : > { %601 = vadd.xlane.f32.xlu0 %v600_v44  ;;  %1200 = vmatprep.subr.bf16.mxu0 %v1488_v0  ;;  %v971_v44 = vld [vmem:[%s1887_s7] ss:$0 sm:$0xff] }
 0x21b   : > { %1202 = vmatpush3.bf16.msra.mxu0 %v1201_v36 }
 0x21c   : > { %1203 = vmatprep.subr.bf16.mxu0 %v1488_v0  ;;  %v973_v0 = vld [vmem:[%s1920_s18] ss:$0 sm:$0xff] }
 0x21f   : > { %1205 = vmatpush3.bf16.msra.mxu0 %v1204_v39 }
 0x2a5   : > { %v602_v60 = vpop.xlane.xlu0 %601 }
 0x2a6   : > { %v603_v61 = vmul.f32 0.0078125, %v602_v60 }
 0x2a8   : > { %v604_v62 = vadd.f32 1e-05, %v603_v61 }
 0x2aa   : > { %1288 = vrsqrt.f32 %v604_v62 }
 0x2b4   : > { %v1289_v63 = vpop.eup %1288 }
 0x2b5   : > { %v607_v2 = vmul.f32 %v1289_v63, %v599_v43 }
 0x2b7   : > { %v614_v4 = vmul.f32 %v968_v1, %v607_v2 }
 0x2b9   : > { %v622_v5 = vadd.f32 %v969_v3, %v614_v4 }
 0x2bb   : > { %1097 = vmatmul.mubr.f32.vlgmr.msra.gmra.mrb[0].mxu1 %v622_v5 }
 0x38e   : > { %v712_v7 = vpop.f32.mrb[0].mxu1 }
 0x38f   : > { %v713_v8 = vadd.f32 %v970_v6, %v712_v7  ;;  %v1098_v9 = vpop.f32.mrb[1].mxu1 }
 0x391   : > { %v716_v10 = vmax.f32 %v713_v8, 0.0 }
 0x393   : > { %v717_v11 = vadd.f32 %v716_v10, %v622_v5 }
 0x395   : > { %718 = vadd.xlane.f32.xlu1 %v717_v11 }
 0x422   : > { %v719_v21 = vpop.xlane.xlu1 %718 }
 0x423   : > { %v720_v22 = vmul.f32 0.0078125, %v719_v21 }
 0x425   : > { %v721_v23 = vsub.f32 %v717_v11, %v720_v22 }
 0x427   : > { %v722_v24 = vmul.f32 %v721_v23, %v721_v23 }
 0x429   : > { %723 = vadd.xlane.f32.xlu1 %v722_v24 }
 0x4b6   : > { %v724_v40 = vpop.xlane.xlu1 %723 }
 0x4b7   : > { %v725_v41 = vmul.f32 0.0078125, %v724_v40 }
 0x4b9   : > { %v726_v42 = vadd.f32 1e-05, %v725_v41 }
 0x4bb   : > { %1290 = vrsqrt.f32 %v726_v42 }
 0x4c5   : > { %v1291_v43 = vpop.eup %1290 }
 0x4c6   : > { %v729_v45 = vmul.f32 %v1291_v43, %v721_v23 }
 0x4c8   : > { %v736_v47 = vmul.f32 %v971_v44, %v729_v45 }
 0x4ca   : > { %v744_v48 = vadd.f32 %v972_v46, %v736_v47 }
 0x4cc   : > { %1132 = vmatmul.mubr.f32.vlgmr.msra.gmra.mrb[2].mxu0 %v744_v48 }
 0x59f   : > { %v834_v49 = vpop.f32.mrb[2].mxu0 }
 0x5a0   : > { %v835_v50 = vadd.f32 %v973_v0, %v834_v49  ;;  %v1133_v51 = vpop.f32.mrb[3].mxu0 }
 0x5a2   : > { %v838_v52 = vmax.f32 %v835_v50, 0.0 }
 0x5a4   : > { %839 = vst [vmem:[%s499_s16] sm:$0xff] %v838_v52 }
 0x5a5   : > { %1419 = shalt.err (!%p1416_p4)
}
 0x5a6   : > { %s1420_s8 = scalar_lea.hbm %s1836_s20, 128  ;;  %s1424_s18 = scalar_lea.hbm %s1921_s24, 256 }
 0x5a7   : > { %p1421_p0 = scmp.ne.s32.totalorder %s1836_s20, %s1420_s8  ;;  %p1425_p8 = scmp.lt.u32.totalorder %s1836_s20, %s1921_s24 }
 0x5a8   : > { %p1426_p13 = scmp.lt.u32.totalorder %s1424_s18, %s1420_s8  ;;  %p1428_p10 = scmp.lt.u32.totalorder %s1420_s8, %s1836_s20 }
 0x5a9   : > { %p1422_p9 = pnand %p1421_p0, %p1716_p5 }
 0x5aa   : > { %p1427_p6 = por %p1426_p13, %p1425_p8 }
 0x5ab   : > { %p1423_p11 = pneg %p1422_p9 }
 0x5ac   : > { %p1429_p3 = por %p1428_p10, %p1427_p6 }
 0x5ae   : > { %p1430_p7 = pnand %p1429_p3, %p1423_p11 }
 0x5b0   : > { %1433 = shalt.err (!%p1430_p7)
}
 0x5b1   : > { %1220 = dma.vmem_to_hbm [thread:$0]  (%p1716_p5), %s1838_s19, 128, %s1836_s20, %s841_s17  }
 0x5b2 PF: > { %s1922_s23 = sld [smem:[#allocation15_spill]]  ;;  %s1923_s12 = sld [smem:[#allocation16_spill]] }
 0x5b3   : > { %p1925_p1 = scmp.ge.s32.totalorder %s1480_s28, 2 }
 0x5b8   : > { %s866_s15 = sand.u32 1, %s1922_s23   ;;  %p1924_p12 = scmp.ne.s32.totalorder %s1923_s12, 0 }
 0x5b9   : > { %s867_s11 = scalar_lea.sflag [#allocation4], %s866_s15 }
 0x5ba   : > { %p1237_p2 = pnand %p1925_p1, %p1924_p12 }
 0x5bc   : > { %1463 = dma.done.wait (!%p1237_p2), %s867_s11, 128  }
 0x5bd   : > { %1465 = vsyncadd (!%p1237_p2), %s867_s11, 4294967168  ;;  %p28_p4 = scmp.ge.s32.totalorder %s1702_s30, 4   ;;  %s1926_s25 = smov %s1472_s26 }
 0x5be   : > { %s1927_s26 = smov %s1476_s27  ;;  %s1928_s27 = smov %s1712_s13 }
 0x5bf   : > { %s1929_s28 = smov %s1702_s30  ;;  %30 = sbr.rel (!%p28_p4) target bundleno = 11 (0xb), region = 129 }
 0x5c6   :  { %872 = vsyncpa [#allocation3], 1 }
 0x5c7   :  { %874 = vsyncpa [#allocation3 + $0x1], 1 }
 0x5c8   :  { %875 = vsyncpa [#allocation6], 1 }
 0x5c9   :  { %876 = vsyncpa [#allocation9], 1 }
 0x5ca   :  { %877 = vsyncpa [#allocation4], 1 }
 0x5cb   :  { %879 = vsyncpa [#allocation4 + $0x1], 1 }

</bundles_post_ra>
